<compile_context>
chip_gen: v7x
topology: tpu7x:2x2x1
jax: 0.10.0
libtpu: 0.0.40
codegen_flags: <defaults>
</compile_context>

<pallas_src>
import functools

import jax
import jax.numpy as jnp
from jax.experimental import pallas as pl
from jax.experimental.pallas import tpu as pltpu

IGNORE_LABEL = 11
_MAX_TILE_P = 32 * 1024                 # cap: 32K pixels per tile (lane axis)
_BLOCK_BYTE_BUDGET = 2 * 1024 * 1024    # ~2 MiB logits block (x2 for double buffering)


def _choose_tile_p(p, c, itemsize):
    tile = _BLOCK_BYTE_BUDGET // max(1, c * itemsize)
    tile = max(128, (tile // 128) * 128)
    tile = min(tile, _MAX_TILE_P)
    if p <= tile:
        return p      # single tile covering the full pixel axis (block == full dim)
    return tile       # multiple of 128; ragged tail masked in-kernel


def _ce2d_kernel(logits_ref, target_ref, sum_ref, cnt_ref, *,
                 ignore_label, num_pixels, tile_p):
    t = pl.program_id(1)

    logits = logits_ref[0].astype(jnp.float32)        # (c, TILE_P), class on sublanes
    tgt = target_ref[0]                               # (1, TILE_P) int32

    # pixel validity: real pixel (ragged tail), non-negative label, not ignore_label
    lane = jax.lax.broadcasted_iota(jnp.int32, tgt.shape, 1)        # (1, TILE_P)
    in_bounds = (t * tile_p + lane) < num_pixels
    valid = (tgt >= 0) & (tgt != ignore_label) & in_bounds           # (1, TILE_P)

    # numerically stable log-softmax along the class (sublane) axis
    m = jnp.max(logits, axis=0, keepdims=True)                       # (1, TILE_P)
    z = logits - m
    lse = jnp.log(jnp.sum(jnp.exp(z), axis=0, keepdims=True))        # (1, TILE_P)

    # target-class logit via one-hot compare (no gather)
    cls_ids = jax.lax.broadcasted_iota(jnp.int32, logits.shape, 0)   # (c, TILE_P)
    tgt_logit = jnp.sum(jnp.where(cls_ids == tgt, z, 0.0),
                        axis=0, keepdims=True)                       # (1, TILE_P)

    per_pixel = jnp.where(valid, lse - tgt_logit, 0.0)               # (1, TILE_P)

    # per-tile partials; the tiny final reduction happens in the wrapper
    sum_ref[...] = jnp.sum(per_pixel).reshape(sum_ref.shape)
    cnt_ref[...] = jnp.sum(valid.astype(jnp.int32)).reshape(cnt_ref.shape)


def cross_entropy_2d(predict, target, ignore_label=IGNORE_LABEL, tile_p=None):
    """predict: (n, c, h, w) float; target: (n, h, w) int.  Returns scalar mean loss."""
    # TODO(synk): optional per-class `weight` rescaling not implemented (default None path only).
    n, c, h, w = predict.shape
    assert target.shape == (n, h, w)
    P = h * w

    # Free reshapes only -- no transpose, no padded copy.
    logits = predict.reshape(n, c, P)
    tgt = target.reshape(n, 1, P).astype(jnp.int32)

    itemsize = jnp.dtype(predict.dtype).itemsize
    if tile_p is None:
        tile_p = _choose_tile_p(P, c, itemsize)
    assert tile_p == P or tile_p % 128 == 0, "tile_p must be a multiple of 128 or equal P"
    num_tiles = pl.cdiv(P, tile_p)

    kernel = functools.partial(_ce2d_kernel, ignore_label=ignore_label,
                               num_pixels=P, tile_p=tile_p)

    cost = pl.CostEstimate(
        flops=6 * n * c * P,
        transcendentals=n * c * P + n * P,
        bytes_accessed=n * c * P * itemsize + n * P * 4 + 2 * n * num_tiles * 4,
    )

    part_sum, part_cnt = pl.pallas_call(
        kernel,
        out_shape=(
            jax.ShapeDtypeStruct((n, num_tiles, 1, 1), jnp.float32),
            jax.ShapeDtypeStruct((n, num_tiles, 1, 1), jnp.int32),
        ),
        grid=(n, num_tiles),
        in_specs=[
            pl.BlockSpec((1, c, tile_p), lambda b, t: (b, 0, t)),
            pl.BlockSpec((1, 1, tile_p), lambda b, t: (b, 0, t)),
        ],
        out_specs=(
            pl.BlockSpec((1, 1, 1, 1), lambda b, t: (b, t, 0, 0)),
            pl.BlockSpec((1, 1, 1, 1), lambda b, t: (b, t, 0, 0)),
        ),
        compiler_params=pltpu.CompilerParams(
            dimension_semantics=("parallel", "parallel"),
        ),
        cost_estimate=cost,
    )(logits, tgt)

    total = jnp.sum(part_sum)
    cnt = jnp.sum(part_cnt)
    # size_average=True -> mean over valid pixels; if no valid pixel, return 0
    # (mirrors the torch module returning zeros when the masked target is empty).
    return jnp.where(cnt > 0, total / cnt.astype(jnp.float32), 0.0)


def _reference(predict, target, ignore_label=IGNORE_LABEL):
    n, c, h, w = predict.shape
    logits = jnp.transpose(predict, (0, 2, 3, 1)).reshape(-1, c).astype(jnp.float32)
    tgt = target.reshape(-1).astype(jnp.int32)
    valid = (tgt >= 0) & (tgt != ignore_label)
    logp = jax.nn.log_softmax(logits, axis=-1)
    nll = -jnp.take_along_axis(logp, jnp.clip(tgt, 0, c - 1)[:, None], axis=-1)[:, 0]
    nll = jnp.where(valid, nll, 0.0)
    cnt = jnp.sum(valid.astype(jnp.float32))
    return jnp.where(cnt > 0, jnp.sum(nll) / cnt, 0.0)


if __name__ == "__main__":
    key = jax.random.PRNGKey(0)

    # Test 1: single-tile path (P = 256)
    k1, k2, k3, k4 = jax.random.split(key, 4)
    n, c, h, w = 2, 12, 16, 16   # ignore_label=11 is a valid class id
    predict = jax.random.normal(k1, (n, c, h, w), dtype=jnp.float32)
    # labels in [-1, c): includes -1 and ignore_label=11 pixels to exercise the mask
    target = jax.random.randint(k2, (n, h, w), minval=-1, maxval=c, dtype=jnp.int32)

    loss = jax.block_until_ready(cross_entropy_2d(predict, target))
    ref = _reference(predict, target)
    assert jnp.allclose(loss, ref, atol=1e-5, rtol=1e-5), (loss, ref)

    # Test 2: multi-tile path with a ragged pixel tail (P = 300, tile_p = 128)
    h2, w2 = 15, 20
    predict2 = jax.random.normal(k3, (n, c, h2, w2), dtype=jnp.float32)
    target2 = jax.random.randint(k4, (n, h2, w2), minval=-1, maxval=c, dtype=jnp.int32)

    loss2 = jax.block_until_ready(cross_entropy_2d(predict2, target2, tile_p=128))
    ref2 = _reference(predict2, target2)
    assert jnp.allclose(loss2, ref2, atol=1e-5, rtol=1e-5), (loss2, ref2)

    print("KERNEL_OK")
</pallas_src>

<mosaic_0001>
module attributes {stable_mosaic.version = 11 : i64} {
  func.func @_ce2d_kernel(%arg0: i32, %arg1: i32, %arg2: memref<1x12x256xf32, #tpu.memory_space<vmem>>, %arg3: memref<1x1x256xi32, #tpu.memory_space<vmem>>, %arg4: memref<1x1x1x1xf32, #tpu.memory_space<vmem>>, %arg5: memref<1x1x1x1xi32, #tpu.memory_space<vmem>>) attributes {dimension_semantics = [#tpu.dimension_semantics<parallel>, #tpu.dimension_semantics<parallel>], iteration_bounds = array<i64: 2, 1>, scalar_prefetch = 0 : i64, scratch_operands = 0 : i64, tpu.core_type = #tpu.core_type<tc>, window_params = [{transform_indices = @transform_0, window_bounds = array<i64: 1, 12, 256>}, {transform_indices = @transform_1, window_bounds = array<i64: 1, 1, 256>}, {transform_indices = @transform_2, window_bounds = array<i64: 1, 1, 1, 1>}, {transform_indices = @transform_3, window_bounds = array<i64: 1, 1, 1, 1>}]} {
    %c0 = arith.constant 0 : index
    %c0_0 = arith.constant 0 : index
    %c0_1 = arith.constant 0 : index
    %0 = vector.load %arg2[%c0, %c0_0, %c0_1] : memref<1x12x256xf32, #tpu.memory_space<vmem>>, vector<1x12x256xf32>
    %1 = vector.shape_cast %0 : vector<1x12x256xf32> to vector<12x256xf32>
    %c0_2 = arith.constant 0 : index
    %c0_3 = arith.constant 0 : index
    %c0_4 = arith.constant 0 : index
    %2 = vector.load %arg3[%c0_2, %c0_3, %c0_4] : memref<1x1x256xi32, #tpu.memory_space<vmem>>, vector<1x1x256xi32>
    %3 = vector.shape_cast %2 : vector<1x1x256xi32> to vector<1x256xi32>
    %4 = tpu.iota {dimensions = array<i32: 1>} : vector<1x256xi32>
    %c256_i32 = arith.constant 256 : i32
    %5 = arith.muli %arg1, %c256_i32 : i32
    %6 = vector.broadcast %5 : i32 to vector<1x256xi32>
    %7 = arith.addi %6, %4 : vector<1x256xi32>
    %c256_i32_5 = arith.constant 256 : i32
    %8 = vector.broadcast %c256_i32_5 : i32 to vector<1x256xi32>
    %9 = arith.cmpi slt, %7, %8 : vector<1x256xi32>
    %c0_i32 = arith.constant 0 : i32
    %10 = vector.broadcast %c0_i32 : i32 to vector<1x256xi32>
    %11 = arith.cmpi sge, %3, %10 : vector<1x256xi32>
    %c11_i32 = arith.constant 11 : i32
    %12 = vector.broadcast %c11_i32 : i32 to vector<1x256xi32>
    %13 = arith.cmpi ne, %3, %12 : vector<1x256xi32>
    %14 = arith.andi %11, %13 : vector<1x256xi1>
    %15 = arith.andi %14, %9 : vector<1x256xi1>
    %cst = arith.constant dense<0xFF800000> : vector<256xf32>
    %16 = vector.multi_reduction <maximumf>, %1, %cst [0] : vector<12x256xf32> to vector<256xf32>
    %17 = vector.shape_cast %16 : vector<256xf32> to vector<1x256xf32>
    %18 = vector.broadcast %17 : vector<1x256xf32> to vector<12x256xf32>
    %19 = arith.subf %1, %18 : vector<12x256xf32>
    %20 = math.exp %19 : vector<12x256xf32>
    %cst_6 = arith.constant dense<0.000000e+00> : vector<256xf32>
    %21 = vector.multi_reduction <add>, %20, %cst_6 [0] : vector<12x256xf32> to vector<256xf32>
    %22 = vector.shape_cast %21 : vector<256xf32> to vector<1x256xf32>
    %23 = math.log %22 : vector<1x256xf32>
    %24 = tpu.iota {dimensions = array<i32: 0>} : vector<12x256xi32>
    %25 = vector.broadcast %3 : vector<1x256xi32> to vector<12x256xi32>
    %26 = arith.cmpi eq, %24, %25 : vector<12x256xi32>
    %cst_7 = arith.constant 0.000000e+00 : f32
    %27 = vector.broadcast %cst_7 : f32 to vector<12x256xf32>
    %28 = arith.select %26, %19, %27 : vector<12x256xi1>, vector<12x256xf32>
    %cst_8 = arith.constant dense<0.000000e+00> : vector<256xf32>
    %29 = vector.multi_reduction <add>, %28, %cst_8 [0] : vector<12x256xf32> to vector<256xf32>
    %30 = vector.shape_cast %29 : vector<256xf32> to vector<1x256xf32>
    %31 = arith.subf %23, %30 : vector<1x256xf32>
    %cst_9 = arith.constant 0.000000e+00 : f32
    %32 = vector.broadcast %cst_9 : f32 to vector<1x256xf32>
    %33 = arith.select %15, %31, %32 : vector<1x256xi1>, vector<1x256xf32>
    %34 = vector.shape_cast %33 : vector<1x256xf32> to vector<1x1x256xf32>
    %cst_10 = arith.constant dense<0.000000e+00> : vector<1xf32>
    %35 = vector.multi_reduction <add>, %34, %cst_10 [1, 2] : vector<1x1x256xf32> to vector<1xf32>
    %36 = vector.shape_cast %35 : vector<1xf32> to vector<1x1x1xf32>
    %37 = vector.extract %36[0, 0, 0] : f32 from vector<1x1x1xf32>
    %38 = vector.broadcast %37 : f32 to vector<1x1x1x1xf32>
    %c0_11 = arith.constant 0 : index
    %c0_12 = arith.constant 0 : index
    %c0_13 = arith.constant 0 : index
    %c0_14 = arith.constant 0 : index
    %39 = vector.load %arg4[%c0_11, %c0_12, %c0_13, %c0_14] : memref<1x1x1x1xf32, #tpu.memory_space<vmem>>, vector<1x1x1x1xf32>
    tpu.vector_store %arg4[%c0_11, %c0_12, %c0_13, %c0_14], %38 {strides = array<i32>} : memref<1x1x1x1xf32, #tpu.memory_space<vmem>>, vector<1x1x1x1xf32>,
    %40 = arith.extui %15 : vector<1x256xi1> to vector<1x256xi32>
    %41 = vector.shape_cast %40 : vector<1x256xi32> to vector<1x1x256xi32>
    %cst_15 = arith.constant dense<0> : vector<1xi32>
    %42 = vector.multi_reduction <add>, %41, %cst_15 [1, 2] : vector<1x1x256xi32> to vector<1xi32>
    %43 = vector.shape_cast %42 : vector<1xi32> to vector<1x1x1xi32>
    %44 = vector.extract %43[0, 0, 0] : i32 from vector<1x1x1xi32>
    %45 = vector.broadcast %44 : i32 to vector<1x1x1x1xi32>
    %c0_16 = arith.constant 0 : index
    %c0_17 = arith.constant 0 : index
    %c0_18 = arith.constant 0 : index
    %c0_19 = arith.constant 0 : index
    %46 = vector.load %arg5[%c0_16, %c0_17, %c0_18, %c0_19] : memref<1x1x1x1xi32, #tpu.memory_space<vmem>>, vector<1x1x1x1xi32>
    tpu.vector_store %arg5[%c0_16, %c0_17, %c0_18, %c0_19], %45 {strides = array<i32>} : memref<1x1x1x1xi32, #tpu.memory_space<vmem>>, vector<1x1x1x1xi32>,
    return
  }
  func.func @transform_0(%arg0: i32, %arg1: i32) -> (i32, i32, i32) {
    %c0_i32 = arith.constant 0 : i32
    %c0_i32_0 = arith.constant 0 : i32
    return %arg0, %c0_i32, %arg1 : i32, i32, i32
  }
  func.func @transform_1(%arg0: i32, %arg1: i32) -> (i32, i32, i32) {
    %c0_i32 = arith.constant 0 : i32
    %c0_i32_0 = arith.constant 0 : i32
    return %arg0, %c0_i32, %arg1 : i32, i32, i32
  }
  func.func @transform_2(%arg0: i32, %arg1: i32) -> (i32, i32, i32, i32) {
    %c0_i32 = arith.constant 0 : i32
    %c0_i32_0 = arith.constant 0 : i32
    %c0_i32_1 = arith.constant 0 : i32
    return %arg0, %arg1, %c0_i32, %c0_i32_0 : i32, i32, i32, i32
  }
  func.func @transform_3(%arg0: i32, %arg1: i32) -> (i32, i32, i32, i32) {
    %c0_i32 = arith.constant 0 : i32
    %c0_i32_0 = arith.constant 0 : i32
    %c0_i32_1 = arith.constant 0 : i32
    return %arg0, %arg1, %c0_i32, %c0_i32_0 : i32, i32, i32, i32
  }
}

</mosaic_0001>

<bundles_post_ra>
// kernel: tpu_custom_call.1
= control target key start
LH: loop header
LB: loop body
LE: loop exit
PB: predicated region body
PF: predicated region fallthrough
CT: control target
= control target key end

     0   :  { %s676_s12 = smov 0   ;;  %s678_s13 = smov 0   ;;  %s763_s0 = inlined_call_operand.vmem [shape: f32[2,12,256], index: 0, kind: input, shape index: {}]   ;;  %s764_s1 = inlined_call_operand.vmem [shape: s32[2,1,256], index: 1, kind: input, shape index: {}]   ;;  %s765_s2 = inlined_call_operand.vmem [shape: f32[2,1,1,1], index: 2, kind: output, shape index: {0}]   ;;  %s766_s3 = inlined_call_operand.vmem [shape: s32[2,1,1,1], index: 3, kind: output, shape index: {1}]  }
   0x1   :  { %s680_s14 = smov 0  }
   0x2 LB: > { %s26_s15 = sadd.s32 1, %s647_s13  ;;  %p579_p0 = scmp.ge.s32.totalorder %s651_s14, 1  ;;  %s651_s14 = sphi %s680_s14, %s14_s14   ;;  %s647_s13 = sphi %s678_s13, %s770_s13   ;;  %s643_s12 = sphi %s676_s12, %s769_s12  }
   0x3   : > { %p28_p1 = scmp.ge.s32.totalorder %s26_s15, 2  ;;  %p179_p2 = scmp.lt.s32.totalorder %s651_s14, 3 }
   0x5   : > { %s772_s15 = smov (%p28_p1, %s26_s15), 0  ;;  %p180_p3 = pnand %p579_p0, %p179_p2 }
   0x6   : > { %p223_p4 = scmp.lt.s32.totalorder (!%p180_p3), %s643_s12, 1  ;;  %v276_v0 = vlaneseq (!%p180_p3)  ;;  %v653_v1 = vmov (!%p180_p3), 1966171168   ;;  %v654_v4 = vmov (!%p180_p3), 1   ;;  %vm289_vm0 = vcmask (!%p180_p3), 1043456  }
   0x7   : > { %183 = sbr.rel (%p180_p3) target bundleno = 300 (0x12c), region = 28  ;;  %v274_v2 = vunpack.c.l.s4 (!%p180_p3), %v653_v1  ;;  %v272_v5 = vcombine.low (!%p180_p3), %v654_v4, %v654_v4  ;;  %vm405_vm6 = vcmask (!%p180_p3), 1040384   ;;  %v655_v24 = vmov (!%p180_p3), 0  }
   0x8   : > { %v696_v3 = vshrl.u32 (!%p180_p3), %v276_v0, 7  ;;  %vm419_vm11 = vcmask (!%p180_p3), 0  }
   0x9   : > { %v275_v6 = vunpack.c.0.s8 (!%p180_p3), %v274_v2 }
   0xa   : > { %v718_v21 = vsub.s32 (!%p180_p3), 0, %v696_v3  ;;  %v721_v22 = vsub.s32 (!%p180_p3), 1, %v696_v3  ;;  %v340_v53 = vadd.s32 (!%p180_p3), 8, %v696_v3 }
   0xb   : > { %v704_v7 = vsub.s32 (!%p180_p3), %v275_v6, %v696_v3 }
   0xd   : > { %v279_v11 = vrot.slane (!%p180_p3), %v272_v5, %v704_v7 }
   0xe   : > { %s774_s12 = smov (!%p223_p4, %s643_s12), 1 }
   0xf   : > { %s582_s16 = sshll.u32 %s774_s12, 1  ;;  %s585_s17 = sshll.u32 %s774_s12, 5  ;;  %v286_v16 = vrot.slane %v279_v11, %v704_v7 }
  0x10   : > { %s239_s20 = scalar_lea.vmem %s764_s1, %s582_s16  ;;  %s230_s23 = scalar_lea.vmem %s763_s0, %s585_s17 }
  0x11   : > { %v257_v8 = vld [vmem:[%s239_s20] sm:$0x3]  ;;  %v254_v10 = vld [vmem:[%s230_s23 + $0x8] sm:$0xff]  ;;  %v255_v12 = vld [vmem:[%s230_s23 + $0x10] sm:$0xf]  ;;  %vm287_vm4 = vcmp.ne.s32.totalorder %v286_v16, 0  ;;  %s246_s26 = scalar_lea.vmem %s765_s2, %s774_s12  ;;  %s252_s30 = scalar_lea.vmem %s766_s3, %s774_s12 }
  0x12   : > { %v253_v9 = vld [vmem:[%s230_s23] sm:$0xff]  ;;  %vm267_vm1 = vcmp.ge.s32.totalorder %v257_v8, 0  ;;  %vm268_vm2 = vcmp.ne.s32.totalorder %v257_v8, 11  ;;  %v256_v13 = vld [vmem:[%s230_s23 + $0x18] sm:$0xf]  ;;  %v290_v14 = vsel %vm289_vm0, %v255_v12, -inf  ;;  %v344_v54 = vrot.slane %v257_v8, %v718_v21 }
  0x13   : > { %v298_v15 = vsel %vm289_vm0, %v256_v13, -inf  ;;  %vm269_vm3 = vmand %vm267_vm1, %vm268_vm2  ;;  %v291_v17 = vmax.f32 %v253_v9, %v290_v14  ;;  %v348_v55 = vrot.slane %v257_v8, %v721_v22 }
  0x14   : > { %v299_v18 = vmax.f32 %v254_v10, %v298_v15  ;;  %vm713_vm5 = vmand %vm269_vm3, %vm287_vm4  ;;  %vm351_vm7 = vcmp.eq.s32.totalorder %v340_v53, %v344_v54  ;;  %vm349_vm9 = vcmp.eq.s32.totalorder %v696_v3, %v344_v54 }
  0x15   : > { %v292_v19 = vrot.slane %v291_v17, 4  ;;  %v421_v25 = vsel %vm713_vm5, 1, %v655_v24  ;;  %vm352_vm8 = vcmp.eq.s32.totalorder %v340_v53, %v348_v55  ;;  %vm350_vm10 = vcmp.eq.s32.totalorder %v696_v3, %v348_v55 }
  0x16   : > { %v300_v23 = vrot.slane %v299_v18, 4  ;;  %v425_v27 = vrot.slane %v421_v25, %v718_v21  ;;  %v429_v28 = vrot.slane %v421_v25, %v721_v22 }
  0x17   : > { %v293_v26 = vmax.f32 %v291_v17, %v292_v19 }
  0x18   : > { %v301_v29 = vmax.f32 %v299_v18, %v300_v23  ;;  %v430_v31 = vsel %vm405_vm6, %v425_v27, 0  ;;  %v431_v32 = vsel %vm405_vm6, %v429_v28, 0 }
  0x19   : > { %v294_v30 = vrot.slane %v293_v26, 2  ;;  %v432_v34 = vadd.s32 %v431_v32, %v430_v31 }
  0x1a   : > { %v302_v33 = vrot.slane %v301_v29, 2 }
  0x1b   : > { %v295_v35 = vmax.f32 %v293_v26, %v294_v30  ;;  %v434_v37 = vshrl.u32 %v432_v34, 16  ;;  %v433_v39 = vand.u32 65535, %v432_v34 }
  0x1c   : > { %v303_v36 = vmax.f32 %v301_v29, %v302_v33 }
  0x1d   : > { %v296_v38 = vrot.slane %v295_v35, 1  ;;  %v436_v41 = vcvt.s32.f32 %v434_v37  ;;  %v435_v46 = vcvt.s32.f32 %v433_v39 }
  0x1e   : > { %v304_v40 = vrot.slane %v303_v36, 1 }
  0x1f   : > { %v297_v42 = vmax.f32 %v295_v35, %v296_v38  ;;  %439 = vadd.xlane.f32.xlu0 %v436_v41 }
  0x20   : > { %v305_v43 = vmax.f32 %v303_v36, %v304_v40 }
  0x21   : > { %v306_v44 = vsub.f32 %v253_v9, %v297_v42  ;;  %v308_v45 = vsub.f32 %v255_v12, %v297_v42 }
  0x22   : > { %v307_v47 = vsub.f32 %v254_v10, %v305_v43  ;;  %v309_v48 = vsub.f32 %v256_v13, %v305_v43 }
  0x23   : > { %v310_v49 = vmul.f32 1.442695, %v306_v44  ;;  %v314_v50 = vmul.f32 1.442695, %v308_v45  ;;  %437 = vadd.xlane.f32.xlu0 %v435_v46  ;;  %v355_v56 = vsel %vm351_vm7, %v308_v45, 0.0  ;;  %v353_v59 = vsel %vm349_vm9, %v306_v44, 0.0 }
  0x24   : > { %v312_v51 = vmul.f32 1.442695, %v307_v47  ;;  %v316_v52 = vmul.f32 1.442695, %v309_v48  ;;  %v356_v57 = vsel %vm352_vm8, %v309_v48, 0.0  ;;  %v357_v60 = vsel %vm289_vm0, %v355_v56, 0.0 }
  0x25   : > { %617 = vpow2.f32 %v310_v49  ;;  %v354_v62 = vsel %vm350_vm10, %v307_v47, 0.0  ;;  %v365_v63 = vsel %vm289_vm0, %v356_v57, 0.0  ;;  %v358_v2 = vadd.f32 %v357_v60, %v353_v59 }
  0x26   : > { %619 = vpow2.f32 %v312_v51  ;;  %v366_v5 = vadd.f32 %v365_v63, %v354_v62 }
  0x27   : > { %621 = vpow2.f32 %v314_v50  ;;  %v359_v11 = vrot.slane %v358_v2, 4 }
  0x28   : > { %623 = vpow2.f32 %v316_v52  ;;  %v367_v13 = vrot.slane %v366_v5, 4 }
  0x29   : > { %v360_v17 = vadd.f32 %v359_v11, %v358_v2 }
  0x2a   : > { %v368_v19 = vadd.f32 %v367_v13, %v366_v5 }
  0x2b   : > { %v361_v26 = vrot.slane %v360_v17, 2 }
  0x2c   : > { %v369_v28 = vrot.slane %v368_v19, 2 }
  0x2d   : > { %v362_v30 = vadd.f32 %v361_v26, %v360_v17 }
  0x2e   : > { %v370_v31 = vadd.f32 %v369_v28, %v368_v19 }
  0x2f   : > { %v618_v58 = vpop.eup %617  ;;  %v363_v32 = vrot.slane %v362_v30, 1 }
  0x30   : > { %v620_v61 = vpop.eup %619  ;;  %v371_v33 = vrot.slane %v370_v31, 1 }
  0x31   : > { %v622_v0 = vpop.eup %621  ;;  %v364_v34 = vadd.f32 %v363_v32, %v362_v30 }
  0x32   : > { %v624_v1 = vpop.eup %623  ;;  %v318_v4 = vsel %vm289_vm0, %v622_v0, 0.0  ;;  %v372_v36 = vadd.f32 %v371_v33, %v370_v31 }
  0x33   : > { %v319_v6 = vadd.f32 %v618_v58, %v318_v4  ;;  %v326_v8 = vsel %vm289_vm0, %v624_v1, 0.0 }
  0x34   : > { %v327_v9 = vadd.f32 %v620_v61, %v326_v8 }
  0x35   : > { %v320_v3 = vrot.slane %v319_v6, 4 }
  0x36   : > { %v328_v10 = vrot.slane %v327_v9, 4 }
  0x37   : > { %v321_v12 = vadd.f32 %v320_v3, %v319_v6 }
  0x38   : > { %v329_v14 = vadd.f32 %v328_v10, %v327_v9 }
  0x39   : > { %v322_v15 = vrot.slane %v321_v12, 2 }
  0x3a   : > { %v330_v16 = vrot.slane %v329_v14, 2 }
  0x3b   : > { %v323_v18 = vadd.f32 %v322_v15, %v321_v12 }
  0x3c   : > { %v331_v23 = vadd.f32 %v330_v16, %v329_v14 }
  0x3d   : > { %v324_v24 = vrot.slane %v323_v18, 1 }
  0x3e   : > { %v332_v25 = vrot.slane %v331_v23, 1 }
  0x3f   : > { %v325_v27 = vadd.f32 %v324_v24, %v323_v18 }
  0x40   : > { %v333_v29 = vadd.f32 %v332_v25, %v331_v23 }
  0x41   : > { %625 = vlog2.f32 %v325_v27 }
  0x42   : > { %627 = vlog2.f32 %v333_v29 }
  0x4b   : > { %v626_v35 = vpop.eup %625 }
  0x4c   : > { %v628_v37 = vpop.eup %627  ;;  %v335_v38 = vmul.f32 0.6931472, %v626_v35 }
  0x4d   : > { %v337_v39 = vmul.f32 0.6931472, %v628_v37 }
  0x4e   : > { %v373_v40 = vsub.f32 %v335_v38, %v364_v34 }
  0x4f   : > { %v374_v41 = vsub.f32 %v337_v39, %v372_v36 }
  0x51   : > { %v377_v42 = vcombine.low %v373_v40, %v374_v41 }
  0x53   : > { %v384_v43 = vrot.slane %v377_v42, %v704_v7 }
  0x55   : > { %v391_v44 = vrot.slane %v384_v43, %v704_v7 }
  0x57   : > { %v393_v45 = vsel %vm713_vm5, %v391_v44, 0.0 }
  0x58   : > { %v398_v46 = vrot.slane %v393_v45, %v718_v21  ;;  %v402_v47 = vrot.slane %v393_v45, %v721_v22 }
  0x5a   : > { %v406_v48 = vsel %vm405_vm6, %v398_v46, 0.0  ;;  %v407_v49 = vsel %vm405_vm6, %v402_v47, 0.0 }
  0x5b   : > { %v408_v50 = vadd.f32 %v407_v49, %v406_v48 }
  0x5d   : > { %409 = vadd.xlane.f32.xlu1 %v408_v50 }
  0xac   : > { %v440_v51 = vpop.xlane.xlu0 %439 }
  0xad   : > { %v442_v52 = vcvt.f32.s32 %v440_v51 }
  0xaf   : > { %v443_v54 = vshll.u32 %v442_v52, 16 }
  0xb0   : > { %v438_v53 = vpop.xlane.xlu0 %437 }
  0xb1   : > { %v441_v55 = vcvt.f32.s32 %v438_v53 }
  0xb3   : > { %v444_v56 = vadd.s32 %v443_v54, %v441_v55 }
  0xb5   : > { %v445_v7 = vrot.slane %v444_v56, 4 }
  0xb7   : > { %v446_v20 = vadd.s32 %v445_v7, %v444_v56 }
  0xb9   : > { %v447_v21 = vrot.slane %v446_v20, 2 }
  0xbb   : > { %v448_v59 = vadd.s32 %v447_v21, %v446_v20 }
  0xbd   : > { %v449_v62 = vrot.slane %v448_v59, 1 }
  0xbf   : > { %v450_v1 = vadd.s32 %v449_v62, %v448_v59 }
  0xea   : > { %v410_v57 = vpop.xlane.xlu1 %409 }
  0xeb   : > { %v411_v58 = vrot.slane %v410_v57, 4 }
  0xed   : > { %v412_v22 = vadd.f32 %v411_v58, %v410_v57 }
  0xef   : > { %v413_v60 = vrot.slane %v412_v22, 2 }
  0xf1   : > { %v414_v61 = vadd.f32 %v413_v60, %v412_v22 }
  0xf3   : > { %v415_v63 = vrot.slane %v414_v61, 1 }
  0xf5   : > { %v416_v0 = vadd.f32 %v415_v63, %v414_v61 }
  0xf7   : > { %586 = vpush %v416_v0 }
  0xf8   : > { %588 = vpush %v450_v1 }
 0x128   : > { %s587_s27 = spop %586 }
 0x129   : > { %v418_v2 = vstv %s587_s27  ;;  %s589_s4 = spop %588 }
 0x12a   : > { %420 = vst.msk [vmem:[%s246_s26] sm:$0x1] %vm419_vm11, %v418_v2  ;;  %v452_v4 = vstv %s589_s4 }
 0x12b   : > { %453 = vst.msk [vmem:[%s252_s30] sm:$0x1] %vm419_vm11, %v452_v4 }
 0x12c PF: > { %s14_s14 = sadd.s32 1, %s651_s14   ;;  %s769_s12 = smov %s647_s13 }
 0x12d   : > { %p11_p5 = scmp.ge.s32.totalorder %s14_s14, 4   ;;  %s770_s13 = smov %s772_s15 }
 0x12f   :  { %13 = sbr.rel (!%p11_p5) target bundleno = 2 (0x2), region = 73 }

</bundles_post_ra>
